<compile_context>
chip_gen: v6e
topology: v6e:2x2x1
jax: 0.10.0
libtpu: 0.0.40
codegen_flags: <defaults>
</compile_context>

<pallas_src>
import functools

import jax
import jax.numpy as jnp
from jax import lax
from jax.experimental import pallas as pl
from jax.experimental.pallas import tpu as pltpu

KSIZE = 3
PAD = 1


def _pixelcnn_mask(mask_type: str) -> jnp.ndarray:
    """3x3 PixelCNN mask (single in/out channel) -- used by the reference."""
    k = KSIZE
    m = jnp.zeros((k, k), jnp.float32)
    m = m.at[: k // 2, :].set(1.0)          # rows above the centre row
    m = m.at[k // 2, : k // 2].set(1.0)     # left of centre in the centre row
    if mask_type == "B":
        m = m.at[k // 2, k // 2].set(1.0)   # the centre pixel itself
    return m


def fused_pixelcnn_kernel(w_ref, b_ref, m_ref, x_ref, o_ref, slab_ref, *,
                          n_layers: int, H: int, W: int):
    """All masked convs fused; `block_n` images per grid step.

    w_ref:   (n_layers*9,)      f32 SMEM  raw 3x3 weights, row-major per layer
                                          (the mask is applied implicitly:
                                          only unmasked taps are ever read).
    b_ref:   (n_layers,)        f32 SMEM  biases.
    m_ref:   (1, 1, L)          f32 VMEM  interior mask (1 inside, 0 on halo).
    x_ref:   (block_n, 1, L)    f32 VMEM  zero-padded input images, flattened.
    o_ref:   (block_n, 1, L)    f32 VMEM  last-layer output (padded layout).
    slab_ref:(block_n, 1, G+L)  f32 VMEM  resident activation + left guard G.
    """
    Wp = W + 2 * PAD
    Hp = H + 2 * PAD
    L = Hp * Wp
    G = Wp + 1                                  # largest |negative| tap shift
    nb = x_ref.shape[0]

    # Stage the padded input into the guarded resident slab (guard zeroed).
    slab_ref[:, :, :G] = jnp.zeros((nb, 1, G), jnp.float32)
    slab_ref[:, :, G:G + L] = x_ref[...]

    # Hoisted out of the layer loop: halo re-zeroing mask (so the next layer
    # keeps seeing proper zero padding) — broadcasts over the image dim.
    interior = m_ref[...]

    def tap(shift):
        # shifted(s)[j] == padded_flat[j + s]; the guard keeps slices in-bounds.
        return slab_ref[:, :, G + shift: G + shift + L]

    for layer in range(n_layers):        # static unroll; mask type is static
        base = layer * 9
        # Mask-'A' taps (also present in 'B'): (0,0) (0,1) (0,2) (1,0).
        acc = tap(-Wp - 1) * w_ref[base + 0] + b_ref[layer]   # bias folded in
        acc = acc + tap(-Wp) * w_ref[base + 1]
        acc = acc + tap(-Wp + 1) * w_ref[base + 2]
        acc = acc + tap(-1) * w_ref[base + 3]
        if layer > 0:                    # mask 'B' adds the centre pixel
            acc = acc + tap(0) * w_ref[base + 4]
        y = acc * interior               # re-zero the 1-pixel halo
        if layer + 1 < n_layers:
            slab_ref[:, :, G:G + L] = y  # stays resident in VMEM
        else:
            o_ref[...] = y


def temp_pixelcnn_forward(x_nchw, weights, biases, *, block_n: int = 1):
    """x_nchw: (N, 1, H, W); weights: (n_layers, 3, 3); biases: (n_layers,)."""
    N, C, H, W = x_nchw.shape
    assert C == 1 and N % block_n == 0
    n_layers = int(weights.shape[0])
    Hp, Wp = H + 2 * PAD, W + 2 * PAD
    L = Hp * Wp
    G = Wp + 1

    # One-time glue (NOT per layer): squeeze channel, zero-pad once and flatten
    # each image so the whole padded image sits on the lane axis.
    x = x_nchw[:, 0, :, :].astype(jnp.float32)
    xflat = jnp.pad(x, ((0, 0), (PAD, PAD), (PAD, PAD))).reshape(N, 1, L)
    w_flat = weights.astype(jnp.float32).reshape(n_layers * 9)
    b_flat = biases.astype(jnp.float32).reshape(n_layers)

    lane = jnp.arange(L, dtype=jnp.int32)
    row, col = lane // Wp, lane % Wp
    interior = ((row >= PAD) & (row < PAD + H) &
                (col >= PAD) & (col < PAD + W)).astype(jnp.float32)
    interior = interior.reshape(1, 1, L)

    kernel = functools.partial(fused_pixelcnn_kernel,
                               n_layers=n_layers, H=H, W=W)

    grid_spec = pltpu.PrefetchScalarGridSpec(
        num_scalar_prefetch=0,
        grid=(N // block_n,),
        in_specs=[
            pl.BlockSpec(memory_space=pltpu.MemorySpace.SMEM),   # weights
            pl.BlockSpec(memory_space=pltpu.MemorySpace.SMEM),   # biases
            pl.BlockSpec((1, 1, L), lambda n: (0, 0, 0)),        # interior mask
            pl.BlockSpec((block_n, 1, L), lambda n: (n, 0, 0)),  # images
        ],
        out_specs=pl.BlockSpec((block_n, 1, L), lambda n: (n, 0, 0)),
        scratch_shapes=[pltpu.VMEM((block_n, 1, G + L), jnp.float32)],
    )

    out_flat = pl.pallas_call(
        kernel,
        out_shape=jax.ShapeDtypeStruct((N, 1, L), jnp.float32),
        grid_spec=grid_spec,
        compiler_params=pltpu.CompilerParams(
            # Batch axis is independent -> v7x's two TensorCores split it.
            dimension_semantics=("parallel",),
            vmem_limit_bytes=32 * 1024 * 1024,
        ),
    )(w_flat, b_flat, interior, xflat)

    out = out_flat.reshape(N, Hp, Wp)[:, PAD:PAD + H, PAD:PAD + W]
    return out[:, None, :, :]


def init_params(n_layers, key):
    """Deterministic raw params: (n_layers,3,3) weights, (n_layers,) biases."""
    ws, bs = [], []
    for _ in range(n_layers):
        key, wk, bk = jax.random.split(key, 3)
        ws.append(jax.random.normal(wk, (KSIZE, KSIZE), jnp.float32) / 3.0)
        bs.append(jax.random.normal(bk, (), jnp.float32) * 0.1)
    return jnp.stack(ws), jnp.stack(bs)


def reference_forward(x_nchw, weights, biases):
    """Pure-JAX reference: explicit mask * weight, lax.conv per layer."""
    x = x_nchw.astype(jnp.float32)
    for i in range(int(weights.shape[0])):
        mask = _pixelcnn_mask("A" if i == 0 else "B")
        w4 = (weights[i] * mask)[None, None, :, :]           # (O=1, I=1, 3, 3)
        x = lax.conv_general_dilated(
            x, w4, window_strides=(1, 1),
            padding=((PAD, PAD), (PAD, PAD)),
            dimension_numbers=("NCHW", "OIHW", "NCHW"),
        ) + biases[i]
    return x


if __name__ == "__main__":
    key = jax.random.PRNGKey(0)
    key, xk = jax.random.split(key)

    N, C, H, W = 2, 1, 16, 16
    n_layers = 3
    x = jax.random.normal(xk, (N, C, H, W), jnp.float32)
    weights, biases = init_params(n_layers, key)

    out = jax.block_until_ready(temp_pixelcnn_forward(x, weights, biases))
    ref = jax.block_until_ready(reference_forward(x, weights, biases))

    assert out.shape == (N, C, H, W)
    assert jnp.allclose(out, ref, atol=1e-4, rtol=1e-4), "mismatch vs reference"

    print("KERNEL_OK")
</pallas_src>

<mosaic_0001>
module attributes {stable_mosaic.version = 11 : i64} {
  func.func @fused_pixelcnn_kernel(%arg0: i32, %arg1: memref<27xf32, #tpu.memory_space<smem>>, %arg2: memref<3xf32, #tpu.memory_space<smem>>, %arg3: memref<1x1x324xf32, #tpu.memory_space<vmem>>, %arg4: memref<1x1x324xf32, #tpu.memory_space<vmem>>, %arg5: memref<1x1x324xf32, #tpu.memory_space<vmem>>, %arg6: memref<1x1x343xf32, #tpu.memory_space<vmem>>) attributes {dimension_semantics = [#tpu.dimension_semantics<parallel>], iteration_bounds = array<i64: 2>, scalar_prefetch = 0 : i64, scratch_operands = 1 : i64, tpu.core_type = #tpu.core_type<tc>, window_params = [{transform_indices = @transform_0, window_bounds = array<i64: 27>}, {transform_indices = @transform_1, window_bounds = array<i64: 3>}, {pipeline_mode = #tpu.pipeline_mode<synchronous>, transform_indices = @transform_2, window_bounds = array<i64: 1, 1, 324>}, {transform_indices = @transform_3, window_bounds = array<i64: 1, 1, 324>}, {transform_indices = @transform_4, window_bounds = array<i64: 1, 1, 324>}]} {
    %cst = arith.constant 0.000000e+00 : f32
    %0 = vector.broadcast %cst : f32 to vector<1x1x19xf32>
    %c0 = arith.constant 0 : index
    %c0_0 = arith.constant 0 : index
    %c0_1 = arith.constant 0 : index
    %1 = vector.load %arg6[%c0, %c0_0, %c0_1] : memref<1x1x343xf32, #tpu.memory_space<vmem>>, vector<1x1x19xf32>
    tpu.vector_store %arg6[%c0, %c0_0, %c0_1], %0 {strides = array<i32>} : memref<1x1x343xf32, #tpu.memory_space<vmem>>, vector<1x1x19xf32>,
    %c0_2 = arith.constant 0 : index
    %c0_3 = arith.constant 0 : index
    %c0_4 = arith.constant 0 : index
    %2 = vector.load %arg4[%c0_2, %c0_3, %c0_4] : memref<1x1x324xf32, #tpu.memory_space<vmem>>, vector<1x1x324xf32>
    %c0_5 = arith.constant 0 : index
    %c0_6 = arith.constant 0 : index
    %c19 = arith.constant 19 : index
    %3 = vector.load %arg6[%c0_5, %c0_6, %c19] : memref<1x1x343xf32, #tpu.memory_space<vmem>>, vector<1x1x324xf32>
    tpu.vector_store %arg6[%c0_5, %c0_6, %c19], %2 {strides = array<i32>} : memref<1x1x343xf32, #tpu.memory_space<vmem>>, vector<1x1x324xf32>,
    %c0_7 = arith.constant 0 : index
    %c0_8 = arith.constant 0 : index
    %c0_9 = arith.constant 0 : index
    %4 = vector.load %arg3[%c0_7, %c0_8, %c0_9] : memref<1x1x324xf32, #tpu.memory_space<vmem>>, vector<1x1x324xf32>
    %c0_10 = arith.constant 0 : index
    %c0_11 = arith.constant 0 : index
    %c0_12 = arith.constant 0 : index
    %5 = vector.load %arg6[%c0_10, %c0_11, %c0_12] : memref<1x1x343xf32, #tpu.memory_space<vmem>>, vector<1x1x324xf32>
    %c0_13 = arith.constant 0 : index
    %6 = memref.load %arg1[%c0_13] : memref<27xf32, #tpu.memory_space<smem>>
    %7 = vector.broadcast %6 : f32 to vector<1x1x324xf32>
    %8 = arith.mulf %5, %7 : vector<1x1x324xf32>
    %c0_14 = arith.constant 0 : index
    %9 = memref.load %arg2[%c0_14] : memref<3xf32, #tpu.memory_space<smem>>
    %10 = vector.broadcast %9 : f32 to vector<1x1x324xf32>
    %11 = arith.addf %8, %10 : vector<1x1x324xf32>
    %c0_15 = arith.constant 0 : index
    %c0_16 = arith.constant 0 : index
    %c1 = arith.constant 1 : index
    %12 = vector.load %arg6[%c0_15, %c0_16, %c1] : memref<1x1x343xf32, #tpu.memory_space<vmem>>, vector<1x1x324xf32>
    %c1_17 = arith.constant 1 : index
    %13 = memref.load %arg1[%c1_17] : memref<27xf32, #tpu.memory_space<smem>>
    %14 = vector.broadcast %13 : f32 to vector<1x1x324xf32>
    %15 = arith.mulf %12, %14 : vector<1x1x324xf32>
    %16 = arith.addf %11, %15 : vector<1x1x324xf32>
    %c0_18 = arith.constant 0 : index
    %c0_19 = arith.constant 0 : index
    %c2 = arith.constant 2 : index
    %17 = vector.load %arg6[%c0_18, %c0_19, %c2] : memref<1x1x343xf32, #tpu.memory_space<vmem>>, vector<1x1x324xf32>
    %c2_20 = arith.constant 2 : index
    %18 = memref.load %arg1[%c2_20] : memref<27xf32, #tpu.memory_space<smem>>
    %19 = vector.broadcast %18 : f32 to vector<1x1x324xf32>
    %20 = arith.mulf %17, %19 : vector<1x1x324xf32>
    %21 = arith.addf %16, %20 : vector<1x1x324xf32>
    %c0_21 = arith.constant 0 : index
    %c0_22 = arith.constant 0 : index
    %c18 = arith.constant 18 : index
    %22 = vector.load %arg6[%c0_21, %c0_22, %c18] : memref<1x1x343xf32, #tpu.memory_space<vmem>>, vector<1x1x324xf32>
    %c3 = arith.constant 3 : index
    %23 = memref.load %arg1[%c3] : memref<27xf32, #tpu.memory_space<smem>>
    %24 = vector.broadcast %23 : f32 to vector<1x1x324xf32>
    %25 = arith.mulf %22, %24 : vector<1x1x324xf32>
    %26 = arith.addf %21, %25 : vector<1x1x324xf32>
    %27 = arith.mulf %26, %4 : vector<1x1x324xf32>
    %c0_23 = arith.constant 0 : index
    %c0_24 = arith.constant 0 : index
    %c19_25 = arith.constant 19 : index
    %28 = vector.load %arg6[%c0_23, %c0_24, %c19_25] : memref<1x1x343xf32, #tpu.memory_space<vmem>>, vector<1x1x324xf32>
    tpu.vector_store %arg6[%c0_23, %c0_24, %c19_25], %27 {strides = array<i32>} : memref<1x1x343xf32, #tpu.memory_space<vmem>>, vector<1x1x324xf32>,
    %c0_26 = arith.constant 0 : index
    %c0_27 = arith.constant 0 : index
    %c0_28 = arith.constant 0 : index
    %29 = vector.load %arg6[%c0_26, %c0_27, %c0_28] : memref<1x1x343xf32, #tpu.memory_space<vmem>>, vector<1x1x324xf32>
    %c9 = arith.constant 9 : index
    %30 = memref.load %arg1[%c9] : memref<27xf32, #tpu.memory_space<smem>>
    %31 = vector.broadcast %30 : f32 to vector<1x1x324xf32>
    %32 = arith.mulf %29, %31 : vector<1x1x324xf32>
    %c1_29 = arith.constant 1 : index
    %33 = memref.load %arg2[%c1_29] : memref<3xf32, #tpu.memory_space<smem>>
    %34 = vector.broadcast %33 : f32 to vector<1x1x324xf32>
    %35 = arith.addf %32, %34 : vector<1x1x324xf32>
    %c0_30 = arith.constant 0 : index
    %c0_31 = arith.constant 0 : index
    %c1_32 = arith.constant 1 : index
    %36 = vector.load %arg6[%c0_30, %c0_31, %c1_32] : memref<1x1x343xf32, #tpu.memory_space<vmem>>, vector<1x1x324xf32>
    %c10 = arith.constant 10 : index
    %37 = memref.load %arg1[%c10] : memref<27xf32, #tpu.memory_space<smem>>
    %38 = vector.broadcast %37 : f32 to vector<1x1x324xf32>
    %39 = arith.mulf %36, %38 : vector<1x1x324xf32>
    %40 = arith.addf %35, %39 : vector<1x1x324xf32>
    %c0_33 = arith.constant 0 : index
    %c0_34 = arith.constant 0 : index
    %c2_35 = arith.constant 2 : index
    %41 = vector.load %arg6[%c0_33, %c0_34, %c2_35] : memref<1x1x343xf32, #tpu.memory_space<vmem>>, vector<1x1x324xf32>
    %c11 = arith.constant 11 : index
    %42 = memref.load %arg1[%c11] : memref<27xf32, #tpu.memory_space<smem>>
    %43 = vector.broadcast %42 : f32 to vector<1x1x324xf32>
    %44 = arith.mulf %41, %43 : vector<1x1x324xf32>
    %45 = arith.addf %40, %44 : vector<1x1x324xf32>
    %c0_36 = arith.constant 0 : index
    %c0_37 = arith.constant 0 : index
    %c18_38 = arith.constant 18 : index
    %46 = vector.load %arg6[%c0_36, %c0_37, %c18_38] : memref<1x1x343xf32, #tpu.memory_space<vmem>>, vector<1x1x324xf32>
    %c12 = arith.constant 12 : index
    %47 = memref.load %arg1[%c12] : memref<27xf32, #tpu.memory_space<smem>>
    %48 = vector.broadcast %47 : f32 to vector<1x1x324xf32>
    %49 = arith.mulf %46, %48 : vector<1x1x324xf32>
    %50 = arith.addf %45, %49 : vector<1x1x324xf32>
    %c0_39 = arith.constant 0 : index
    %c0_40 = arith.constant 0 : index
    %c19_41 = arith.constant 19 : index
    %51 = vector.load %arg6[%c0_39, %c0_40, %c19_41] : memref<1x1x343xf32, #tpu.memory_space<vmem>>, vector<1x1x324xf32>
    %c13 = arith.constant 13 : index
    %52 = memref.load %arg1[%c13] : memref<27xf32, #tpu.memory_space<smem>>
    %53 = vector.broadcast %52 : f32 to vector<1x1x324xf32>
    %54 = arith.mulf %51, %53 : vector<1x1x324xf32>
    %55 = arith.addf %50, %54 : vector<1x1x324xf32>
    %56 = arith.mulf %55, %4 : vector<1x1x324xf32>
    %c0_42 = arith.constant 0 : index
    %c0_43 = arith.constant 0 : index
    %c19_44 = arith.constant 19 : index
    %57 = vector.load %arg6[%c0_42, %c0_43, %c19_44] : memref<1x1x343xf32, #tpu.memory_space<vmem>>, vector<1x1x324xf32>
    tpu.vector_store %arg6[%c0_42, %c0_43, %c19_44], %56 {strides = array<i32>} : memref<1x1x343xf32, #tpu.memory_space<vmem>>, vector<1x1x324xf32>,
    %c0_45 = arith.constant 0 : index
    %c0_46 = arith.constant 0 : index
    %c0_47 = arith.constant 0 : index
    %58 = vector.load %arg6[%c0_45, %c0_46, %c0_47] : memref<1x1x343xf32, #tpu.memory_space<vmem>>, vector<1x1x324xf32>
    %c18_48 = arith.constant 18 : index
    %59 = memref.load %arg1[%c18_48] : memref<27xf32, #tpu.memory_space<smem>>
    %60 = vector.broadcast %59 : f32 to vector<1x1x324xf32>
    %61 = arith.mulf %58, %60 : vector<1x1x324xf32>
    %c2_49 = arith.constant 2 : index
    %62 = memref.load %arg2[%c2_49] : memref<3xf32, #tpu.memory_space<smem>>
    %63 = vector.broadcast %62 : f32 to vector<1x1x324xf32>
    %64 = arith.addf %61, %63 : vector<1x1x324xf32>
    %c0_50 = arith.constant 0 : index
    %c0_51 = arith.constant 0 : index
    %c1_52 = arith.constant 1 : index
    %65 = vector.load %arg6[%c0_50, %c0_51, %c1_52] : memref<1x1x343xf32, #tpu.memory_space<vmem>>, vector<1x1x324xf32>
    %c19_53 = arith.constant 19 : index
    %66 = memref.load %arg1[%c19_53] : memref<27xf32, #tpu.memory_space<smem>>
    %67 = vector.broadcast %66 : f32 to vector<1x1x324xf32>
    %68 = arith.mulf %65, %67 : vector<1x1x324xf32>
    %69 = arith.addf %64, %68 : vector<1x1x324xf32>
    %c0_54 = arith.constant 0 : index
    %c0_55 = arith.constant 0 : index
    %c2_56 = arith.constant 2 : index
    %70 = vector.load %arg6[%c0_54, %c0_55, %c2_56] : memref<1x1x343xf32, #tpu.memory_space<vmem>>, vector<1x1x324xf32>
    %c20 = arith.constant 20 : index
    %71 = memref.load %arg1[%c20] : memref<27xf32, #tpu.memory_space<smem>>
    %72 = vector.broadcast %71 : f32 to vector<1x1x324xf32>
    %73 = arith.mulf %70, %72 : vector<1x1x324xf32>
    %74 = arith.addf %69, %73 : vector<1x1x324xf32>
    %c0_57 = arith.constant 0 : index
    %c0_58 = arith.constant 0 : index
    %c18_59 = arith.constant 18 : index
    %75 = vector.load %arg6[%c0_57, %c0_58, %c18_59] : memref<1x1x343xf32, #tpu.memory_space<vmem>>, vector<1x1x324xf32>
    %c21 = arith.constant 21 : index
    %76 = memref.load %arg1[%c21] : memref<27xf32, #tpu.memory_space<smem>>
    %77 = vector.broadcast %76 : f32 to vector<1x1x324xf32>
    %78 = arith.mulf %75, %77 : vector<1x1x324xf32>
    %79 = arith.addf %74, %78 : vector<1x1x324xf32>
    %c0_60 = arith.constant 0 : index
    %c0_61 = arith.constant 0 : index
    %c19_62 = arith.constant 19 : index
    %80 = vector.load %arg6[%c0_60, %c0_61, %c19_62] : memref<1x1x343xf32, #tpu.memory_space<vmem>>, vector<1x1x324xf32>
    %c22 = arith.constant 22 : index
    %81 = memref.load %arg1[%c22] : memref<27xf32, #tpu.memory_space<smem>>
    %82 = vector.broadcast %81 : f32 to vector<1x1x324xf32>
    %83 = arith.mulf %80, %82 : vector<1x1x324xf32>
    %84 = arith.addf %79, %83 : vector<1x1x324xf32>
    %85 = arith.mulf %84, %4 : vector<1x1x324xf32>
    %c0_63 = arith.constant 0 : index
    %c0_64 = arith.constant 0 : index
    %c0_65 = arith.constant 0 : index
    %86 = vector.load %arg5[%c0_63, %c0_64, %c0_65] : memref<1x1x324xf32, #tpu.memory_space<vmem>>, vector<1x1x324xf32>
    tpu.vector_store %arg5[%c0_63, %c0_64, %c0_65], %85 {strides = array<i32>} : memref<1x1x324xf32, #tpu.memory_space<vmem>>, vector<1x1x324xf32>,
    return
  }
  func.func @transform_0(%arg0: i32) -> i32 {
    %c0_i32 = arith.constant 0 : i32
    %c0_i32_0 = arith.constant 0 : i32
    return %c0_i32 : i32
  }
  func.func @transform_1(%arg0: i32) -> i32 {
    %c0_i32 = arith.constant 0 : i32
    %c0_i32_0 = arith.constant 0 : i32
    return %c0_i32 : i32
  }
  func.func @transform_2(%arg0: i32) -> (i32, i32, i32) {
    %c0_i32 = arith.constant 0 : i32
    %c0_i32_0 = arith.constant 0 : i32
    %c0_i32_1 = arith.constant 0 : i32
    %c0_i32_2 = arith.constant 0 : i32
    return %c0_i32, %c0_i32_0, %c0_i32_1 : i32, i32, i32
  }
  func.func @transform_3(%arg0: i32) -> (i32, i32, i32) {
    %c0_i32 = arith.constant 0 : i32
    %c0_i32_0 = arith.constant 0 : i32
    %c0_i32_1 = arith.constant 0 : i32
    return %arg0, %c0_i32, %c0_i32_0 : i32, i32, i32
  }
  func.func @transform_4(%arg0: i32) -> (i32, i32, i32) {
    %c0_i32 = arith.constant 0 : i32
    %c0_i32_0 = arith.constant 0 : i32
    %c0_i32_1 = arith.constant 0 : i32
    return %arg0, %c0_i32, %c0_i32_0 : i32, i32, i32
  }
}

</mosaic_0001>

<bundles_post_ra>
// kernel: tpu_custom_call.1
= control target key start
LH: loop header
LB: loop body
LE: loop exit
PB: predicated region body
PF: predicated region fallthrough
CT: control target
= control target key end

     0   :  { %9 = vsyncpa [#allocation6], 0  ;;  %s987_s0 = inlined_call_operand.hbm [shape: f32[27], index: 0, kind: input, shape index: {}]   ;;  %s988_s1 = inlined_call_operand.hbm [shape: f32[3], index: 1, kind: input, shape index: {}]   ;;  %s989_s2 = inlined_call_operand.vmem [shape: f32[1,1,324], index: 2, kind: input, shape index: {}]   ;;  %s990_s3 = inlined_call_operand.hbm [shape: f32[2,1,324], index: 3, kind: input, shape index: {}]   ;;  %s991_s4 = inlined_call_operand.hbm [shape: f32[2,1,324], index: 4, kind: output, shape index: {}]  }
   0x1   :  { %10 = vsyncpa [#allocation8], 0 }
   0x2   :  { %11 = vsyncpa [#allocation4], 0 }
   0x3   :  { %13 = vsyncpa [#allocation4 + $0x1], 0 }
   0x4   :  { %14 = vsyncpa [#allocation5], 0 }
   0x5   :  { %16 = vsyncpa [#allocation5 + $0x1], 0  ;;  %s780_s15 = smov 0   ;;  %s782_s16 = smov 0  }
   0x6   :  { %s784_s17 = smov 0   ;;  %s786_s18 = smov 0  }
   0x7 LB: > { %s801_s19 = sadd.s32 4294967295, %s743_s18   ;;  %s517_s20 = sadd.s32 4294967294, %s743_s18   ;;  %s743_s18 = sphi %s786_s18, %s1015_s18   ;;  %s739_s17 = sphi %s784_s17, %s1014_s17   ;;  %s735_s16 = sphi %s782_s16, %s1013_s16   ;;  %s731_s15 = sphi %s780_s15, %s1012_s15  }
   0x8   : > { %p105_p0 = scmp.ne.s32.totalorder %s735_s16, %s731_s15  ;;  %p992_p1 = scmp.eq.s32.totalorder %s801_s19, 0 }
   0x9   : > { %p129_p2 = scmp.eq.s32.totalorder %s801_s19, 1  ;;  %p135_p3 = scmp.eq.s32.totalorder %s517_s20, 1 }
   0xa   : > { %p810_p4 = por %p992_p1, %p105_p0  ;;  %p518_p5 = scmp.ge.s32.totalorder %s743_s18, 1 }
   0xb   : > { %p815_p6 = por %p135_p3, %p105_p0  ;;  %p142_p7 = scmp.lt.s32.totalorder %s743_s18, 3 }
   0xc   : > { %s996_s21 = scalar_select %p810_p4, 1, 0 }
   0xd   : > { %s997_s22 = scalar_select %p815_p6, 1, 0 }
   0xe   : > { %p820_p8 = pnand %p518_p5, %p142_p7  ;;  %s828_s24 = sadd.s32 1, %s743_s18  }
   0xf   : > { %s92_s25 = sadd.s32 1, %s739_s17  ;;  %s89_s26 = ssub.s32 %s743_s18, %s828_s24 }
  0x10   : > { %s998_s23 = scalar_select %p820_p8, 1, 0 }
  0x11   : > { %p560_p10 = pneg %p820_p8  ;;  %p90_p12 = scmp.eq.s32.totalorder %s89_s26, 0 }
  0x12   : > { %p99_p13 = scmp.ne.s32.totalorder %s739_s17, %s735_s16  ;;  %p100_p0 = scmp.eq.s32.totalorder %s743_s18, 0 }
  0x13   : > { %p561_p11 = pnand %p560_p10, %p992_p1  ;;  %s745_s27 = smov [#allocation3]  }
  0x14   : > { %s746_s30 = smov [#allocation7]   ;;  %p101_p3 = por %p100_p0, %p99_p13 }
  0x15   : > { %563 = dma.hbm_to_smem (!%p561_p11), %s987_s0, 16, %s745_s27, [#allocation6]  }
  0x16   : > { %566 = dma.hbm_to_smem (!%p561_p11), %s988_s1, 16, %s746_s30, [#allocation8]  }
  0x17   : > { %s845_s7 = scalar_select %p90_p12, %s739_s17, %s92_s25  }
  0x18   : > { %p849_p5 = por %p129_p2, %p99_p13  ;;  %p577_p7 = scmp.lt.s32.totalorder %s743_s18, 2 }
  0x19   : > { %s176_s9 = sand.u32 1, %s739_s17   ;;  %s545_s11 = smul.u32 48, %s743_s18 }
  0x1a   : > { %s999_s8 = scalar_select %p849_p5, 1, 0 }
  0x1b   : > { %s544_s10 = smul.u32 3, %s176_s9  ;;  %p856_p10 = pnand %p577_p7, %p101_p3 }
  0x1c   : > { %s863_s20 = scalar_lea.hbm %s990_s3, %s545_s11  ;;  %s177_s27 = scalar_lea.sflag [#allocation4], %s176_s9 }
  0x1d   : > { %s180_s25 = scalar_lea.vmem [#allocation9], %s544_s10  ;;  %s643_s28 = scalar_lea.hbm %s863_s20, 48 }
  0x1e   : > { %s188_s26 = sshll.u32 %s180_s25, 4  ;;  %p644_p2 = scmp.ne.s32.totalorder %s863_s20, %s643_s28  ;;  %s189_s26 = int_to_ptr.vmem [resolvable:$true] %s188_s26 }
  0x1f   : > { %p645_p11 = pneg %p856_p10  ;;  %s648_s5 = scalar_lea.hbm %s990_s3, 96 }
  0x20   : > { %p649_p0 = scmp.lt.s32.totalorder %s863_s20, %s990_s3  ;;  %p650_p3 = scmp.lt.s32.totalorder %s648_s5, %s643_s28 }
  0x21   : > { %p646_p12 = pnand %p645_p11, %p644_p2 }
  0x22   : > { %p651_p7 = por %p650_p3, %p649_p0 }
  0x23   : > { %p647_p13 = pneg %p646_p12 }
  0x25   : > { %p652_p9 = pnand %p651_p7, %p647_p13 }
  0x27   : > { %655 = shalt.err (!%p652_p9)
}
  0x28   : > { %s656_s10 = scalar_lea.vmem %s189_s26, 48  ;;  %s747_s9 = smov [#allocation9]  }
  0x29   : > { %p657_p1 = scmp.ne.s32.totalorder %s189_s26, %s656_s10  ;;  %s661_s13 = sshll.u32 %s747_s9, 4  ;;  %s662_s13 = int_to_ptr.vmem [resolvable:$false] %s661_s13 }
  0x2a   : > { %s663_s14 = scalar_lea.vmem %s662_s13, 96  ;;  %p664_p2 = scmp.lt.s32.totalorder %s189_s26, %s662_s13 }
  0x2b   : > { %p659_p6 = pnand %p657_p1, %p645_p11  ;;  %p665_p12 = scmp.lt.s32.totalorder %s663_s14, %s656_s10 }
  0x2d   : > { %p660_p5 = pneg %p659_p6  ;;  %p666_p4 = por %p665_p12, %p664_p2 }
  0x2f   : > { %p667_p8 = pnand %p666_p4, %p660_p5 }
  0x31   : > { %670 = shalt.err (!%p667_p8)
}
  0x32   : > { %570 = dma.hbm_to_vmem [thread:$0]  (!%p856_p10), %s863_s20, 48, %s189_s26, %s177_s27  }
  0x33   : > { %p1001_p13 = scmp.ne.s32.totalorder %s998_s23, 0 }
  0x34   : > { %p1002_p9 = scmp.eq.s32.totalorder (!%p1001_p13), %s801_s19, 0 }
  0x35   : > { %197 = sbr.rel (%p1001_p13) target bundleno = 850 (0x352), region = 36 }
  0x3a   : > { %714 = dma.done.wait (%p1002_p9), [#allocation6], 16   ;;  %p1003_p1 = pmov %p1002_p9 }
  0x3c   : > { %716 = vsyncadd (%p1003_p1), [#allocation6], 4294967280  ;;  %p1004_p6 = pmov %p1003_p1 }
  0x3d   : > { %p1005_p11 = pmov %p1003_p1 }
  0x3e   : > { %718 = dma.done.wait (%p1004_p6), [#allocation8], 16  }
  0x3f   : > { %720 = vsyncadd (%p1005_p11), [#allocation8], 4294967280  ;;  %s890_s12 = sand.u32 1, %s735_s16   ;;  %p1006_p4 = scmp.ne.s32.totalorder %s996_s21, 0 }
  0x40   : > { %s546_s23 = smul.u32 3, %s890_s12  ;;  %s208_s20 = scalar_lea.sflag [#allocation4], %s890_s12 }
  0x42   : > { %s211_s25 = scalar_lea.vmem [#allocation9], %s546_s23 }
  0x43   : > { %722 = dma.done.wait (%p1006_p4), %s208_s20, 48  }
  0x44   : > { %724 = vsyncadd (%p1006_p4), %s208_s20, 4294967248 }
  0x45   : > { %216 = sfence }
  0x46   : > { %v242_v0 = vld [vmem:[%s211_s25] sm:$0x7]  ;;  %v237_v1 = vlaneseq  ;;  %s748_s26 = smov 19   ;;  %v749_v2 = vmov 0.0   ;;  %vm247_vm3 = vcmask 154624   ;;  %s527_s27 = sld [smem:[#allocation3 + $0x2]] }
  0x47   : > { %244 = vrot.lane.b32.xlu0 %v242_v0, %s748_s26  ;;  %s526_s21 = sld [smem:[#allocation3 + $0x1]]  ;;  %s750_s29 = smov 126   ;;  %vm269_vm5 = vcmask 1039360   ;;  %vm280_vm6 = vcmask 1031168   ;;  %vm291_vm7 = vcmask 900096   ;;  %vm347_vm8 = vcmask 891904  }
  0x48   : > { %vm239_vm0 = vcmp.lt.s32.totalorder %v237_v1, 19  ;;  %vm250_vm1 = vcmp.ge.s32.totalorder %v237_v1, 19  ;;  %vm251_vm2 = vcmp.lt.s32.totalorder %v237_v1, 343  ;;  %s528_s28 = sld [smem:[#allocation3 + $0x3]]  ;;  %s751_s30 = smov 127   ;;  %vm407_vm9 = vcmp.lt.s32.totalorder %v237_v1, 324 }
  0x49   : > { %241 = vst.msk [vmem:[#allocation2] sm:$0x1] %vm239_vm0, %v749_v2  ;;  %vm904_vm4 = vmand %vm250_vm1, %vm251_vm2  ;;  %s752_s5 = smov 110   ;;  %s256_s6 = sld [smem:[#allocation3]]  ;;  %v920_v29 = vld [vmem:[%s989_s2] sm:$0x7] }
  0x4a   : > { %s259_s11 = sld [smem:[#allocation7]]  ;;  %p1009_p5 = scmp.ne.s32.totalorder %s999_s8, 0 }
  0x4b   : > { %s532_s13 = sld [smem:[#allocation3 + $0xb]] }
  0x4c   : > { %v274_v7 = vstv %s527_s27  ;;  %s531_s14 = sld [smem:[#allocation3 + $0xa]]  ;;  %s753_s27 = smov 109  }
  0x4d   : > { %v263_v8 = vstv %s526_s21  ;;  %s534_s20 = sld [smem:[#allocation3 + $0xd]] }
  0x4e   : > { %v285_v12 = vstv %s528_s28  ;;  %s533_s25 = sld [smem:[#allocation3 + $0xc]] }
  0x4f   : > { %v257_v14 = vstv %s256_s6  ;;  %s529_s21 = sld [smem:[#allocation3 + $0x9]] }
  0x50   : > { %v260_v16 = vstv %s259_s11  ;;  %s530_s28 = sld [smem:[#allocation7 + $0x1]] }
  0x51   : > { %v321_v35 = vstv %s532_s13  ;;  %s538_s6 = sld [smem:[#allocation3 + $0x14]] }
  0x52   : > { %v311_v36 = vstv %s531_s14  ;;  %s537_s11 = sld [smem:[#allocation3 + $0x13]] }
  0x53   : > { %v341_v40 = vstv %s534_s20  ;;  %s540_s10 = sld [smem:[#allocation3 + $0x16]] }
  0x54   : > { %v331_v41 = vstv %s533_s25  ;;  %s539_s9 = sld [smem:[#allocation3 + $0x15]] }
  0x55   : > { %v305_v44 = vstv %s529_s21  ;;  %s536_s13 = sld [smem:[#allocation7 + $0x2]] }
  0x56   : > { %v308_v46 = vstv %s530_s28 }
  0xb9   : > { %v245_v3 = vpop.permute.xlu0 %244 }
  0xba   : > { %v246_v4 = vrot.slane %v245_v3, 7 }
  0xbc   : > { %v248_v6 = vsel %vm247_vm3, %v246_v4, %v245_v3 }
  0xbd   : > { %253 = vst.msk [vmem:[#allocation2] sm:$0x7] %vm904_vm4, %v248_v6  ;;  %v377_v6 = vstv %s538_s6 }
  0xc4   : > { %v255_v9 = vld [vmem:[#allocation2] sm:$0x7] }
  0xc5   : > { %v275_v10 = vmul.f32 %v274_v7, %v255_v9  ;;  %v264_v11 = vmul.f32 %v263_v8, %v255_v9  ;;  %v286_v13 = vmul.f32 %v285_v12, %v255_v9  ;;  %v258_v15 = vmul.f32 %v257_v14, %v255_v9 }
  0xc6   : > { %v367_v7 = vstv %s537_s11  ;;  %v387_v12 = vstv %s539_s9 }
  0xc7   : > { %277 = vrot.lane.b32.xlu1 %v275_v10, %s750_s29  ;;  %266 = vrot.lane.b32.xlu0 %v264_v11, %s751_s30  ;;  %v261_v21 = vadd.f32 %v260_v16, %v258_v15  ;;  %v397_v11 = vstv %s540_s10  ;;  %v364_v16 = vstv %s536_s13 }
  0xcb   : > { %288 = vrot.lane.b32.xlu1 %v286_v13, %s752_s5 }
 0x139   : > { %v278_v17 = vpop.permute.xlu1 %277  ;;  %v267_v18 = vpop.permute.xlu0 %266 }
 0x13a   : > { %v279_v19 = vrot.slane %v278_v17, 1  ;;  %v268_v20 = vrot.slane %v267_v18, 1 }
 0x13c   : > { %v270_v22 = vsel %vm269_vm5, %v267_v18, %v268_v20  ;;  %v281_v25 = vsel %vm280_vm6, %v278_v17, %v279_v19 }
 0x13d   : > { %v272_v23 = vadd.f32 %v270_v22, %v261_v21  ;;  %v289_v24 = vpop.permute.xlu1 %288 }
 0x13e   : > { %v290_v26 = vrot.slane %v289_v24, 1 }
 0x13f   : > { %v283_v27 = vadd.f32 %v281_v25, %v272_v23 }
 0x140   : > { %v292_v28 = vsel %vm291_vm7, %v289_v24, %v290_v26 }
 0x141   : > { %v294_v30 = vadd.f32 %v292_v28, %v283_v27 }
 0x143   : > { %v295_v31 = vmul.f32 %v294_v30, %v920_v29 }
 0x145   : > { %297 = vrot.lane.b32.xlu0 %v295_v31, %s748_s26 }
 0x1b7   : > { %v298_v32 = vpop.permute.xlu0 %297 }
 0x1b8   : > { %v299_v33 = vrot.slane %v298_v32, 7 }
 0x1ba   : > { %v300_v34 = vsel %vm247_vm3, %v299_v33, %v298_v32 }
 0x1bb   : > { %302 = vst.msk [vmem:[#allocation2] sm:$0x7] %vm904_vm4, %v300_v34 }
 0x1c2   : > { %v303_v37 = vld [vmem:[#allocation2] sm:$0x7] }
 0x1c3   : > { %v322_v38 = vmul.f32 %v321_v35, %v303_v37  ;;  %v312_v39 = vmul.f32 %v311_v36, %v303_v37  ;;  %v342_v42 = vmul.f32 %v341_v40, %v303_v37  ;;  %v332_v43 = vmul.f32 %v331_v41, %v303_v37 }
 0x1c4   : > { %v306_v45 = vmul.f32 %v305_v44, %v303_v37 }
 0x1c5   : > { %324 = vrot.lane.b32.xlu0 %v322_v38, %s750_s29  ;;  %314 = vrot.lane.b32.xlu1 %v312_v39, %s751_s30 }
 0x1c6   : > { %v309_v51 = vadd.f32 %v308_v46, %v306_v45 }
 0x1c9   : > { %344 = vrot.lane.b32.xlu0 %v342_v42, %s753_s27  ;;  %334 = vrot.lane.b32.xlu1 %v332_v43, %s752_s5 }
 0x237   : > { %v325_v47 = vpop.permute.xlu0 %324  ;;  %v315_v48 = vpop.permute.xlu1 %314 }
 0x238   : > { %v326_v49 = vrot.slane %v325_v47, 1  ;;  %v316_v50 = vrot.slane %v315_v48, 1 }
 0x23a   : > { %v317_v52 = vsel %vm269_vm5, %v315_v48, %v316_v50  ;;  %v327_v56 = vsel %vm280_vm6, %v325_v47, %v326_v49 }
 0x23b   : > { %v319_v53 = vadd.f32 %v317_v52, %v309_v51  ;;  %v345_v54 = vpop.permute.xlu0 %344  ;;  %v335_v55 = vpop.permute.xlu1 %334 }
 0x23c   : > { %v346_v57 = vrot.slane %v345_v54, 1  ;;  %v336_v58 = vrot.slane %v335_v55, 1 }
 0x23d   : > { %v329_v59 = vadd.f32 %v327_v56, %v319_v53 }
 0x23e   : > { %v337_v60 = vsel %vm291_vm7, %v335_v55, %v336_v58  ;;  %v348_v62 = vsel %vm347_vm8, %v345_v54, %v346_v57 }
 0x23f   : > { %v339_v61 = vadd.f32 %v337_v60, %v329_v59 }
 0x241   : > { %v350_v63 = vadd.f32 %v348_v62, %v339_v61 }
 0x243   : > { %v351_v0 = vmul.f32 %v350_v63, %v920_v29 }
 0x245   : > { %353 = vrot.lane.b32.xlu1 %v351_v0, %s748_s26  ;;  %s535_s26 = sld [smem:[#allocation3 + $0x12]] }
 0x24b   : > { %v361_v5 = vstv %s535_s26 }
 0x2b7   : > { %v354_v2 = vpop.permute.xlu1 %353 }
 0x2b8   : > { %v355_v3 = vrot.slane %v354_v2, 7 }
 0x2ba   : > { %v356_v4 = vsel %vm247_vm3, %v355_v3, %v354_v2 }
 0x2bb   : > { %358 = vst.msk [vmem:[#allocation2] sm:$0x7] %vm904_vm4, %v356_v4 }
 0x2c2   : > { %v359_v8 = vld [vmem:[#allocation2] sm:$0x7] }
 0x2c3   : > { %v378_v9 = vmul.f32 %v377_v6, %v359_v8  ;;  %v368_v10 = vmul.f32 %v367_v7, %v359_v8  ;;  %v398_v13 = vmul.f32 %v397_v11, %v359_v8  ;;  %v388_v14 = vmul.f32 %v387_v12, %v359_v8 }
 0x2c4   : > { %v362_v15 = vmul.f32 %v361_v5, %v359_v8 }
 0x2c5   : > { %380 = vrot.lane.b32.xlu1 %v378_v9, %s750_s29  ;;  %370 = vrot.lane.b32.xlu0 %v368_v10, %s751_s30  ;;  %s547_s29 = smul.u32 48, %s801_s19  ;;  %s236_s30 = scalar_lea.vmem [#allocation10], %s546_s23 }
 0x2c6   : > { %v365_v21 = vadd.f32 %v364_v16, %v362_v15  ;;  %s754_s19 = smov [#allocation10]  }
 0x2c7   : > { %s423_s25 = scalar_lea.hbm %s991_s4, %s547_s29  ;;  %s675_s23 = sshll.u32 %s754_s19, 4  ;;  %s676_s23 = int_to_ptr.vmem [resolvable:$false] %s675_s23 }
 0x2c8   : > { %s677_s28 = scalar_lea.vmem %s676_s23, 96 }
 0x2c9   : > { %400 = vrot.lane.b32.xlu1 %v398_v13, %s753_s27  ;;  %390 = vrot.lane.b32.xlu0 %v388_v14, %s752_s5  ;;  %s425_s5 = sshll.u32 %s236_s30, 4  ;;  %s411_s27 = scalar_lea.sflag [#allocation5], %s890_s12  ;;  %s426_s5 = int_to_ptr.vmem [resolvable:$true] %s425_s5 }
 0x2ca   : > { %s671_s21 = scalar_lea.vmem %s426_s5, 48  ;;  %p678_p3 = scmp.lt.s32.totalorder %s426_s5, %s676_s23 }
 0x2cb   : > { %p672_p8 = scmp.ne.s32.totalorder %s426_s5, %s671_s21  ;;  %p679_p7 = scmp.lt.s32.totalorder %s677_s28, %s671_s21 }
 0x2cd   : > { %p673_p10 = pnand %p672_p8, %p1009_p5  ;;  %p680_p2 = por %p679_p7, %p678_p3 }
 0x2cf   : > { %p674_p0 = pneg %p673_p10 }
 0x2d1   : > { %p681_p12 = pnand %p680_p2, %p674_p0 }
 0x337   : > { %v381_v17 = vpop.permute.xlu1 %380  ;;  %v371_v18 = vpop.permute.xlu0 %370 }
 0x338   : > { %v382_v19 = vrot.slane %v381_v17, 1  ;;  %v372_v20 = vrot.slane %v371_v18, 1 }
 0x33a   : > { %v373_v22 = vsel %vm269_vm5, %v371_v18, %v372_v20  ;;  %v383_v26 = vsel %vm280_vm6, %v381_v17, %v382_v19 }
 0x33b   : > { %v375_v23 = vadd.f32 %v373_v22, %v365_v21  ;;  %v401_v24 = vpop.permute.xlu1 %400  ;;  %v391_v25 = vpop.permute.xlu0 %390 }
 0x33c   : > { %v402_v27 = vrot.slane %v401_v24, 1  ;;  %v392_v28 = vrot.slane %v391_v25, 1 }
 0x33d   : > { %v385_v30 = vadd.f32 %v383_v26, %v375_v23 }
 0x33e   : > { %v393_v31 = vsel %vm291_vm7, %v391_v25, %v392_v28  ;;  %v403_v33 = vsel %vm347_vm8, %v401_v24, %v402_v27 }
 0x33f   : > { %v395_v32 = vadd.f32 %v393_v31, %v385_v30 }
 0x341   : > { %v405_v34 = vadd.f32 %v403_v33, %v395_v32 }
 0x343   : > { %v406_v35 = vmul.f32 %v405_v34, %v920_v29 }
 0x345   : > { %409 = vst.msk [vmem:[%s236_s30] sm:$0x7] %vm407_vm9, %v406_v35 }
 0x346   : > { %684 = shalt.err (!%p681_p12)
}
 0x347   : > { %s685_s6 = scalar_lea.hbm %s423_s25, 48  ;;  %s689_s10 = scalar_lea.hbm %s991_s4, 96 }
 0x348   : > { %p686_p13 = scmp.ne.s32.totalorder %s423_s25, %s685_s6  ;;  %p690_p6 = scmp.lt.s32.totalorder %s423_s25, %s991_s4 }
 0x349   : > { %p691_p11 = scmp.lt.s32.totalorder %s689_s10, %s685_s6 }
 0x34a   : > { %p687_p9 = pnand %p686_p13, %p1009_p5 }
 0x34b   : > { %p692_p4 = por %p691_p11, %p690_p6 }
 0x34c   : > { %p688_p1 = pneg %p687_p9 }
 0x34e   : > { %p693_p8 = pnand %p692_p4, %p688_p1 }
 0x350   : > { %696 = shalt.err (!%p693_p8)
}
 0x351   : > { %558 = dma.vmem_to_hbm [thread:$0]  (%p1009_p5), %s426_s5, 48, %s423_s25, %s411_s27  }
 0x352 PF: > { %s437_s13 = sand.u32 1, %s731_s15   ;;  %p1010_p10 = scmp.ne.s32.totalorder %s997_s22, 0 }
 0x353   : > { %p1011_p0 = scmp.ge.s32.totalorder %s743_s18, 2  ;;  %s438_s29 = scalar_lea.sflag [#allocation5], %s437_s13 }
 0x355   : > { %p572_p3 = pnand %p1011_p0, %p1010_p10 }
 0x357   : > { %p573_p7 = pneg %p572_p3 }
 0x359   : > { %726 = dma.done.wait (%p573_p7), %s438_s29, 48  }
 0x35a   : > { %728 = vsyncadd (%p573_p7), %s438_s29, 4294967248  ;;  %p19_p2 = scmp.ge.s32.totalorder %s828_s24, 4   ;;  %s1012_s15 = smov %s735_s16 }
 0x35b   : > { %s1013_s16 = smov %s739_s17  ;;  %s1014_s17 = smov %s845_s7 }
 0x35c   : > { %s1015_s18 = smov %s828_s24  ;;  %21 = sbr.rel (!%p19_p2) target bundleno = 7 (0x7), region = 90 }
 0x361   :  { %443 = vsyncpa [#allocation4], 1 }
 0x362   :  { %445 = vsyncpa [#allocation4 + $0x1], 1 }
 0x363   :  { %446 = vsyncpa [#allocation5], 1 }
 0x364   :  { %448 = vsyncpa [#allocation5 + $0x1], 1 }
 0x365   :  { %449 = vsyncpa [#allocation6], 1 }
 0x366   :  { %451 = vsyncpa [#allocation6 + $0x1], 1 }
 0x367   :  { %452 = vsyncpa [#allocation8], 1 }

</bundles_post_ra>
